<compile_context>
chip_gen: v5e
topology: v5e:2x2
jax: 0.10.0
libtpu: 0.0.40
codegen_flags: <defaults>
</compile_context>

<pallas_src>
import jax
import jax.numpy as jnp
from jax.experimental import pallas as pl
from jax.experimental.pallas import tpu as pltpu

EPS = 1e-5


# ------------------------------ Pallas kernel --------------------------------

def _bottleneck_kernel(x_ref, w1_ref, w2_ref, w3_ref, b1_ref, b2_ref, b3_ref, o_ref):
    # x_ref:  (H, W*Cin)        lane-dense slab for one image
    # w1_ref: (W*Cin, W*Cm)     block-diagonal 1x1 conv (BN1 scale folded in)
    # w2_ref: (3, W*Cm, W*Cm)   per-kh banded 3x3 conv (BN2 scale folded in)
    # w3_ref: (W*Cm, W*C3)      block-diagonal 1x1 conv (BN3 scale folded in)
    # b*_ref: (1, W*C*)         folded BN biases, tiled over W
    # o_ref:  (H, W*C3)
    x = x_ref[...].astype(jnp.float32)                                  # (H, W*Cin)
    H = x.shape[0]

    # conv1 (1x1) + bn1 + relu
    h1 = jnp.dot(x, w1_ref[...], preferred_element_type=jnp.float32)
    h1 = jnp.maximum(h1 + b1_ref[...], 0.0)                             # (H, W*Cm)

    # conv2 (3x3, pad=1) + bn2 + relu: 3 accumulated dots.  For each kernel row kh
    # the kw shift + channel mix is the banded matrix w2_ref[kh]; the kh row shift
    # is a small (H, H) 0/1 shift matrix (zero-fill at the H borders).
    row = jax.lax.broadcasted_iota(jnp.int32, (H, H), 0)
    col = jax.lax.broadcasted_iota(jnp.int32, (H, H), 1)
    acc = jnp.zeros_like(h1)
    for kh in range(3):
        shift = jnp.where(col == row + (kh - 1), 1.0, 0.0).astype(jnp.float32)
        t = jnp.dot(h1, w2_ref[kh], preferred_element_type=jnp.float32)  # (H, W*Cm)
        acc = acc + jnp.dot(shift, t, preferred_element_type=jnp.float32)
    h2 = jnp.maximum(acc + b2_ref[...], 0.0)                            # (H, W*Cm)

    # conv3 (1x1) + bn3 + identity add + relu (residual slab == input slab: C3 == Cin)
    h3 = jnp.dot(h2, w3_ref[...], preferred_element_type=jnp.float32)
    out = jnp.maximum(h3 + b3_ref[...] + x, 0.0)                        # (H, W*C3)
    o_ref[...] = out.astype(o_ref.dtype)


# ------------------------------- JAX wrapper ----------------------------------

def fold_bn(gamma, beta, mean, var):
    """Fold eval-mode BatchNorm into a per-channel scale and bias."""
    scale = gamma / jnp.sqrt(var + EPS)
    bias = beta - mean * scale
    return scale, bias


def _block_diag_1x1(w_scaled, W):
    """(Cout, Cin) 1x1-conv weight -> (W*Cin, W*Cout) block-diagonal matmul weight."""
    wT = w_scaled.T                                       # (Cin, Cout)
    eye = jnp.eye(W, dtype=wT.dtype)
    bd = jnp.einsum("pw,co->pcwo", eye, wT)               # (W, Cin, W, Cout)
    return bd.reshape(W * wT.shape[0], W * wT.shape[1])


def _banded_3x3(w_scaled, W):
    """(Cout, Cin, 3, 3) weight -> (3, W*Cin, W*Cout) per-kh banded matrices
    implementing the kw shift (padding=1) + channel contraction."""
    Cout, Cin = w_scaled.shape[:2]
    wT = jnp.transpose(w_scaled, (2, 3, 1, 0))            # (kh, kw, Cin, Cout)
    wp = jnp.arange(W)[None, :, None]                     # source column w'
    wd = jnp.arange(W)[None, None, :]                     # destination column w
    kw = jnp.arange(3)[:, None, None]
    mask = (wp == wd + kw - 1).astype(wT.dtype)           # (3, W, W)
    band = jnp.einsum("kpw,hkco->hpcwo", mask, wT)        # (3, W, Cin, W, Cout)
    return band.reshape(3, W * Cin, W * Cout)


def bottleneck_forward(x_nchw, p):
    """Pallas implementation of Bottleneck.forward (stride=1, no downsample)."""
    N, Cin, H, W = x_nchw.shape
    planes = p["w1"].shape[0]
    C3 = 4 * planes
    assert Cin == C3, "identity shortcut requires in_planes == expansion*planes"
    assert H % 8 == 0, "H must be a multiple of 8 (sublane tiling)"

    s1, b1 = fold_bn(*p["bn1"])
    s2, b2 = fold_bn(*p["bn2"])
    s3, b3 = fold_bn(*p["bn3"])

    # Fold BN scales into the conv weights (per output channel) -> epilogue is +bias only.
    w1s = p["w1"][:, :, 0, 0] * s1[:, None]               # (planes, Cin)
    w2s = p["w2"] * s2[:, None, None, None]               # (planes, planes, 3, 3)
    w3s = p["w3"][:, :, 0, 0] * s3[:, None]               # (C3, planes)

    w1_bd = _block_diag_1x1(w1s, W)                       # (W*Cin,    W*planes)
    w2_bands = _banded_3x3(w2s, W)                        # (3, W*planes, W*planes)
    w3_bd = _block_diag_1x1(w3s, W)                       # (W*planes, W*C3)

    b1_s = jnp.tile(b1, W).reshape(1, W * planes).astype(jnp.float32)
    b2_s = jnp.tile(b2, W).reshape(1, W * planes).astype(jnp.float32)
    b3_s = jnp.tile(b3, W).reshape(1, W * C3).astype(jnp.float32)

    # Lane-dense slab layout: one image = H rows of W*C contiguous channels.
    x_slab = jnp.transpose(x_nchw, (0, 2, 3, 1)).reshape(N * H, W * Cin)

    out_slab = pl.pallas_call(
        _bottleneck_kernel,
        out_shape=jax.ShapeDtypeStruct((N * H, W * C3), x_nchw.dtype),
        grid=(N,),
        in_specs=[
            pl.BlockSpec((H, W * Cin), lambda b: (b, 0)),
            pl.BlockSpec((W * Cin, W * planes), lambda b: (0, 0)),
            pl.BlockSpec((3, W * planes, W * planes), lambda b: (0, 0, 0)),
            pl.BlockSpec((W * planes, W * C3), lambda b: (0, 0)),
            pl.BlockSpec((1, W * planes), lambda b: (0, 0)),
            pl.BlockSpec((1, W * planes), lambda b: (0, 0)),
            pl.BlockSpec((1, W * C3), lambda b: (0, 0)),
        ],
        out_specs=pl.BlockSpec((H, W * C3), lambda b: (b, 0)),
        compiler_params=pltpu.CompilerParams(dimension_semantics=("parallel",)),
    )(x_slab, w1_bd, w2_bands, w3_bd, b1_s, b2_s, b3_s)

    return jnp.transpose(out_slab.reshape(N, H, W, C3), (0, 3, 1, 2))


# ---------------------------- pure-JAX reference ------------------------------

def ref_bottleneck(x, p):
    def bn(y, g, b, m, v):
        g, b, m, v = (t[None, :, None, None] for t in (g, b, m, v))
        return g * (y - m) / jnp.sqrt(v + EPS) + b

    def conv(y, w, stride=1, pad=0):
        return jax.lax.conv_general_dilated(
            y, w, (stride, stride), [(pad, pad), (pad, pad)],
            dimension_numbers=("NCHW", "OIHW", "NCHW"))

    out = jax.nn.relu(bn(conv(x, p["w1"]), *p["bn1"]))
    out = jax.nn.relu(bn(conv(out, p["w2"], 1, 1), *p["bn2"]))
    out = bn(conv(out, p["w3"]), *p["bn3"])
    return jax.nn.relu(out + x)


# ----------------------------------- main -------------------------------------

if __name__ == "__main__":
    key = jax.random.PRNGKey(0)
    keys = jax.random.split(key, 8)

    in_planes, planes = 16, 4          # expansion * planes == in_planes
    N, H, W = 2, 16, 16

    x = jax.random.normal(keys[0], (N, in_planes, H, W), jnp.float32)

    def bn_params(k, c):
        k1, k2, k3, k4 = jax.random.split(k, 4)
        gamma = jax.random.uniform(k1, (c,), minval=0.5, maxval=1.5)
        beta = 0.1 * jax.random.normal(k2, (c,))
        mean = 0.1 * jax.random.normal(k3, (c,))
        var = jax.random.uniform(k4, (c,), minval=0.5, maxval=1.5)
        return (gamma, beta, mean, var)

    params = {
        "w1": 0.1 * jax.random.normal(keys[1], (planes, in_planes, 1, 1), jnp.float32),
        "w2": 0.1 * jax.random.normal(keys[2], (planes, planes, 3, 3), jnp.float32),
        "w3": 0.1 * jax.random.normal(keys[3], (4 * planes, planes, 1, 1), jnp.float32),
        "bn1": bn_params(keys[4], planes),
        "bn2": bn_params(keys[5], planes),
        "bn3": bn_params(keys[6], 4 * planes),
    }

    fwd = jax.jit(bottleneck_forward)
    out = jax.block_until_ready(fwd(x, params))
    ref = jax.block_until_ready(ref_bottleneck(x, params))

    assert out.shape == (N, 4 * planes, H, W), out.shape
    assert jnp.allclose(out, ref, atol=1e-4, rtol=1e-4), float(jnp.abs(out - ref).max())
    print("KERNEL_OK")
</pallas_src>

<mosaic_0001>
module attributes {stable_mosaic.version = 11 : i64} {
  func.func @_bottleneck_kernel(%arg0: i32, %arg1: memref<16x256xf32, #tpu.memory_space<vmem>>, %arg2: memref<256x64xf32, #tpu.memory_space<vmem>>, %arg3: memref<3x64x64xf32, #tpu.memory_space<vmem>>, %arg4: memref<64x256xf32, #tpu.memory_space<vmem>>, %arg5: memref<1x64xf32, #tpu.memory_space<vmem>>, %arg6: memref<1x64xf32, #tpu.memory_space<vmem>>, %arg7: memref<1x256xf32, #tpu.memory_space<vmem>>, %arg8: memref<16x256xf32, #tpu.memory_space<vmem>>) attributes {dimension_semantics = [#tpu.dimension_semantics<parallel>], iteration_bounds = array<i64: 2>, scalar_prefetch = 0 : i64, scratch_operands = 0 : i64, tpu.core_type = #tpu.core_type<tc>, window_params = [{transform_indices = @transform_0, window_bounds = array<i64: 16, 256>}, {pipeline_mode = #tpu.pipeline_mode<synchronous>, transform_indices = @transform_1, window_bounds = array<i64: 256, 64>}, {pipeline_mode = #tpu.pipeline_mode<synchronous>, transform_indices = @transform_2, window_bounds = array<i64: 3, 64, 64>}, {pipeline_mode = #tpu.pipeline_mode<synchronous>, transform_indices = @transform_3, window_bounds = array<i64: 64, 256>}, {pipeline_mode = #tpu.pipeline_mode<synchronous>, transform_indices = @transform_4, window_bounds = array<i64: 1, 64>}, {pipeline_mode = #tpu.pipeline_mode<synchronous>, transform_indices = @transform_5, window_bounds = array<i64: 1, 64>}, {pipeline_mode = #tpu.pipeline_mode<synchronous>, transform_indices = @transform_6, window_bounds = array<i64: 1, 256>}, {transform_indices = @transform_7, window_bounds = array<i64: 16, 256>}]} {
    %c0 = arith.constant 0 : index
    %c0_0 = arith.constant 0 : index
    %0 = vector.load %arg1[%c0, %c0_0] : memref<16x256xf32, #tpu.memory_space<vmem>>, vector<16x256xf32>
    %c0_1 = arith.constant 0 : index
    %c0_2 = arith.constant 0 : index
    %1 = vector.load %arg2[%c0_1, %c0_2] : memref<256x64xf32, #tpu.memory_space<vmem>>, vector<256x64xf32>
    %cst = arith.constant dense<0.000000e+00> : vector<16x64xf32>
    %2 = tpu.matmul %0, %1, %cst {dimension_numbers = #tpu.dot_dimension_numbers<[1], [0], [0], [1], [0, 0, 1, 1], [], []>} : vector<16x256xf32>, vector<256x64xf32>, vector<16x64xf32> -> vector<16x64xf32>
    %c0_3 = arith.constant 0 : index
    %c0_4 = arith.constant 0 : index
    %3 = vector.load %arg5[%c0_3, %c0_4] : memref<1x64xf32, #tpu.memory_space<vmem>>, vector<1x64xf32>
    %4 = vector.broadcast %3 : vector<1x64xf32> to vector<16x64xf32>
    %5 = arith.addf %2, %4 : vector<16x64xf32>
    %cst_5 = arith.constant 0.000000e+00 : f32
    %6 = vector.broadcast %cst_5 : f32 to vector<16x64xf32>
    %7 = arith.maximumf %5, %6 : vector<16x64xf32>
    %8 = tpu.iota {dimensions = array<i32: 0>} : vector<16x16xi32>
    %9 = tpu.iota {dimensions = array<i32: 1>} : vector<16x16xi32>
    %cst_6 = arith.constant 0.000000e+00 : f32
    %10 = vector.broadcast %cst_6 : f32 to vector<16x64xf32>
    %c-1_i32 = arith.constant -1 : i32
    %11 = vector.broadcast %c-1_i32 : i32 to vector<16x16xi32>
    %12 = arith.addi %8, %11 : vector<16x16xi32>
    %13 = arith.cmpi eq, %9, %12 : vector<16x16xi32>
    %cst_7 = arith.constant 1.000000e+00 : f32
    %cst_8 = arith.constant 0.000000e+00 : f32
    %14 = vector.broadcast %cst_7 : f32 to vector<16x16xf32>
    %15 = vector.broadcast %cst_8 : f32 to vector<16x16xf32>
    %16 = arith.select %13, %14, %15 : vector<16x16xi1>, vector<16x16xf32>
    %c0_9 = arith.constant 0 : index
    %c0_10 = arith.constant 0 : index
    %c0_11 = arith.constant 0 : index
    %17 = vector.load %arg3[%c0_9, %c0_10, %c0_11] : memref<3x64x64xf32, #tpu.memory_space<vmem>>, vector<1x64x64xf32>
    %18 = vector.shape_cast %17 : vector<1x64x64xf32> to vector<64x64xf32>
    %cst_12 = arith.constant dense<0.000000e+00> : vector<16x64xf32>
    %19 = tpu.matmul %7, %18, %cst_12 {dimension_numbers = #tpu.dot_dimension_numbers<[1], [0], [0], [1], [0, 0, 1, 1], [], []>} : vector<16x64xf32>, vector<64x64xf32>, vector<16x64xf32> -> vector<16x64xf32>
    %cst_13 = arith.constant dense<0.000000e+00> : vector<16x64xf32>
    %20 = tpu.matmul %16, %19, %cst_13 {dimension_numbers = #tpu.dot_dimension_numbers<[1], [0], [0], [1], [0, 0, 1, 1], [], []>} : vector<16x16xf32>, vector<16x64xf32>, vector<16x64xf32> -> vector<16x64xf32>
    %21 = arith.addf %10, %20 : vector<16x64xf32>
    %c0_i32 = arith.constant 0 : i32
    %22 = vector.broadcast %c0_i32 : i32 to vector<16x16xi32>
    %23 = arith.addi %8, %22 : vector<16x16xi32>
    %24 = arith.cmpi eq, %9, %23 : vector<16x16xi32>
    %cst_14 = arith.constant 1.000000e+00 : f32
    %cst_15 = arith.constant 0.000000e+00 : f32
    %25 = vector.broadcast %cst_14 : f32 to vector<16x16xf32>
    %26 = vector.broadcast %cst_15 : f32 to vector<16x16xf32>
    %27 = arith.select %24, %25, %26 : vector<16x16xi1>, vector<16x16xf32>
    %c1 = arith.constant 1 : index
    %c0_16 = arith.constant 0 : index
    %c0_17 = arith.constant 0 : index
    %28 = vector.load %arg3[%c1, %c0_16, %c0_17] : memref<3x64x64xf32, #tpu.memory_space<vmem>>, vector<1x64x64xf32>
    %29 = vector.shape_cast %28 : vector<1x64x64xf32> to vector<64x64xf32>
    %cst_18 = arith.constant dense<0.000000e+00> : vector<16x64xf32>
    %30 = tpu.matmul %7, %29, %cst_18 {dimension_numbers = #tpu.dot_dimension_numbers<[1], [0], [0], [1], [0, 0, 1, 1], [], []>} : vector<16x64xf32>, vector<64x64xf32>, vector<16x64xf32> -> vector<16x64xf32>
    %cst_19 = arith.constant dense<0.000000e+00> : vector<16x64xf32>
    %31 = tpu.matmul %27, %30, %cst_19 {dimension_numbers = #tpu.dot_dimension_numbers<[1], [0], [0], [1], [0, 0, 1, 1], [], []>} : vector<16x16xf32>, vector<16x64xf32>, vector<16x64xf32> -> vector<16x64xf32>
    %32 = arith.addf %21, %31 : vector<16x64xf32>
    %c1_i32 = arith.constant 1 : i32
    %33 = vector.broadcast %c1_i32 : i32 to vector<16x16xi32>
    %34 = arith.addi %8, %33 : vector<16x16xi32>
    %35 = arith.cmpi eq, %9, %34 : vector<16x16xi32>
    %cst_20 = arith.constant 1.000000e+00 : f32
    %cst_21 = arith.constant 0.000000e+00 : f32
    %36 = vector.broadcast %cst_20 : f32 to vector<16x16xf32>
    %37 = vector.broadcast %cst_21 : f32 to vector<16x16xf32>
    %38 = arith.select %35, %36, %37 : vector<16x16xi1>, vector<16x16xf32>
    %c2 = arith.constant 2 : index
    %c0_22 = arith.constant 0 : index
    %c0_23 = arith.constant 0 : index
    %39 = vector.load %arg3[%c2, %c0_22, %c0_23] : memref<3x64x64xf32, #tpu.memory_space<vmem>>, vector<1x64x64xf32>
    %40 = vector.shape_cast %39 : vector<1x64x64xf32> to vector<64x64xf32>
    %cst_24 = arith.constant dense<0.000000e+00> : vector<16x64xf32>
    %41 = tpu.matmul %7, %40, %cst_24 {dimension_numbers = #tpu.dot_dimension_numbers<[1], [0], [0], [1], [0, 0, 1, 1], [], []>} : vector<16x64xf32>, vector<64x64xf32>, vector<16x64xf32> -> vector<16x64xf32>
    %cst_25 = arith.constant dense<0.000000e+00> : vector<16x64xf32>
    %42 = tpu.matmul %38, %41, %cst_25 {dimension_numbers = #tpu.dot_dimension_numbers<[1], [0], [0], [1], [0, 0, 1, 1], [], []>} : vector<16x16xf32>, vector<16x64xf32>, vector<16x64xf32> -> vector<16x64xf32>
    %43 = arith.addf %32, %42 : vector<16x64xf32>
    %c0_26 = arith.constant 0 : index
    %c0_27 = arith.constant 0 : index
    %44 = vector.load %arg6[%c0_26, %c0_27] : memref<1x64xf32, #tpu.memory_space<vmem>>, vector<1x64xf32>
    %45 = vector.broadcast %44 : vector<1x64xf32> to vector<16x64xf32>
    %46 = arith.addf %43, %45 : vector<16x64xf32>
    %cst_28 = arith.constant 0.000000e+00 : f32
    %47 = vector.broadcast %cst_28 : f32 to vector<16x64xf32>
    %48 = arith.maximumf %46, %47 : vector<16x64xf32>
    %c0_29 = arith.constant 0 : index
    %c0_30 = arith.constant 0 : index
    %49 = vector.load %arg4[%c0_29, %c0_30] : memref<64x256xf32, #tpu.memory_space<vmem>>, vector<64x256xf32>
    %cst_31 = arith.constant dense<0.000000e+00> : vector<16x256xf32>
    %50 = tpu.matmul %48, %49, %cst_31 {dimension_numbers = #tpu.dot_dimension_numbers<[1], [0], [0], [1], [0, 0, 1, 1], [], []>} : vector<16x64xf32>, vector<64x256xf32>, vector<16x256xf32> -> vector<16x256xf32>
    %c0_32 = arith.constant 0 : index
    %c0_33 = arith.constant 0 : index
    %51 = vector.load %arg7[%c0_32, %c0_33] : memref<1x256xf32, #tpu.memory_space<vmem>>, vector<1x256xf32>
    %52 = vector.broadcast %51 : vector<1x256xf32> to vector<16x256xf32>
    %53 = arith.addf %50, %52 : vector<16x256xf32>
    %54 = arith.addf %53, %0 : vector<16x256xf32>
    %cst_34 = arith.constant 0.000000e+00 : f32
    %55 = vector.broadcast %cst_34 : f32 to vector<16x256xf32>
    %56 = arith.maximumf %54, %55 : vector<16x256xf32>
    %c0_35 = arith.constant 0 : index
    %c0_36 = arith.constant 0 : index
    %57 = vector.load %arg8[%c0_35, %c0_36] : memref<16x256xf32, #tpu.memory_space<vmem>>, vector<16x256xf32>
    tpu.vector_store %arg8[%c0_35, %c0_36], %56 {strides = array<i32>} : memref<16x256xf32, #tpu.memory_space<vmem>>, vector<16x256xf32>,
    return
  }
  func.func @transform_0(%arg0: i32) -> (i32, i32) {
    %c0_i32 = arith.constant 0 : i32
    %c0_i32_0 = arith.constant 0 : i32
    return %arg0, %c0_i32 : i32, i32
  }
  func.func @transform_1(%arg0: i32) -> (i32, i32) {
    %c0_i32 = arith.constant 0 : i32
    %c0_i32_0 = arith.constant 0 : i32
    %c0_i32_1 = arith.constant 0 : i32
    return %c0_i32, %c0_i32_0 : i32, i32
  }
  func.func @transform_2(%arg0: i32) -> (i32, i32, i32) {
    %c0_i32 = arith.constant 0 : i32
    %c0_i32_0 = arith.constant 0 : i32
    %c0_i32_1 = arith.constant 0 : i32
    %c0_i32_2 = arith.constant 0 : i32
    return %c0_i32, %c0_i32_0, %c0_i32_1 : i32, i32, i32
  }
  func.func @transform_3(%arg0: i32) -> (i32, i32) {
    %c0_i32 = arith.constant 0 : i32
    %c0_i32_0 = arith.constant 0 : i32
    %c0_i32_1 = arith.constant 0 : i32
    return %c0_i32, %c0_i32_0 : i32, i32
  }
  func.func @transform_4(%arg0: i32) -> (i32, i32) {
    %c0_i32 = arith.constant 0 : i32
    %c0_i32_0 = arith.constant 0 : i32
    %c0_i32_1 = arith.constant 0 : i32
    return %c0_i32, %c0_i32_0 : i32, i32
  }
  func.func @transform_5(%arg0: i32) -> (i32, i32) {
    %c0_i32 = arith.constant 0 : i32
    %c0_i32_0 = arith.constant 0 : i32
    %c0_i32_1 = arith.constant 0 : i32
    return %c0_i32, %c0_i32_0 : i32, i32
  }
  func.func @transform_6(%arg0: i32) -> (i32, i32) {
    %c0_i32 = arith.constant 0 : i32
    %c0_i32_0 = arith.constant 0 : i32
    %c0_i32_1 = arith.constant 0 : i32
    return %c0_i32, %c0_i32_0 : i32, i32
  }
  func.func @transform_7(%arg0: i32) -> (i32, i32) {
    %c0_i32 = arith.constant 0 : i32
    %c0_i32_0 = arith.constant 0 : i32
    return %arg0, %c0_i32 : i32, i32
  }
}

</mosaic_0001>

<bundles_post_ra>
// kernel: tile.18
= control target key start
LH: loop header
LB: loop body
LE: loop exit
PB: predicated region body
PF: predicated region fallthrough
CT: control target
= control target key end

     0   :  { %s28_s0 = inlined_call_operand.vmem [shape: f32[4], index: 0, kind: input, shape index: {}]   ;;  %s29_s1 = inlined_call_operand.vmem [shape: f32[16,4], index: 1, kind: output, shape index: {}]  }
   0x1   :  { %v4_v0 = vld [vmem:[%s28_s0] ss:$0 sm:$0xff] }
   0x2   :  { %5 = vst [vmem:[%s29_s1] sm:$0xff] %v4_v0 }
   0x3   :  { %8 = vst [vmem:[%s29_s1 + $0x8] sm:$0xff] %v4_v0 }

// kernel: tile.19
= control target key start
LH: loop header
LB: loop body
LE: loop exit
PB: predicated region body
PF: predicated region fallthrough
CT: control target
= control target key end

     0   :  { %s131_s10 = smov 60   ;;  %s132_s11 = smov 52   ;;  %vm3_vm0 = vcmask 31744   ;;  %vm9_vm1 = vcmask 523744   ;;  %vm15_vm2 = vcmask 490944   ;;  %vm21_vm3 = vcmask 458144   ;;  %s207_s0 = inlined_call_operand.vmem [shape: f32[16,4], index: 0, kind: input, shape index: {}]   ;;  %s208_s1 = inlined_call_operand.vmem [shape: f32[1,64], index: 1, kind: output, shape index: {}]  }
   0x1   :  { %v101_v0 = vld [vmem:[%s207_s0 + $0xf] sm:$0x1]   ;;  %v103_v1 = vld [vmem:[%s207_s0 + $0xd] sm:$0x1]   ;;  %v105_v2 = vld [vmem:[%s207_s0 + $0xb] sm:$0x1]  }
   0x2   :  { %7 = vrot.lane.b32.xlu0 %v101_v0, %s131_s10  ;;  %19 = vrot.lane.b32.xlu1 %v103_v1, %s132_s11  ;;  %s133_s14 = smov 44   ;;  %v102_v3 = vld [vmem:[%s207_s0 + $0xe] sm:$0x1]   ;;  %v104_v4 = vld [vmem:[%s207_s0 + $0xc] sm:$0x1]   ;;  %s134_s19 = smov 56  }
   0x3   :  { %31 = vrot.lane.b32.xlu2 %v105_v2, %s133_s14  ;;  %s135_s20 = smov 48   ;;  %v106_v5 = vld [vmem:[%s207_s0 + $0xa] sm:$0x1]   ;;  %s136_s23 = smov 40   ;;  %v107_v6 = vld [vmem:[%s207_s0 + $0x9] sm:$0x1]  }
   0x4   :  { %v108_v7 = vld [vmem:[%s207_s0 + $0x8] sm:$0x1]   ;;  %s137_s28 = smov 36   ;;  %s138_s29 = smov 32   ;;  %v109_v8 = vld [vmem:[%s207_s0 + $0x7] sm:$0x1]  }
   0x5   :  { %s139_s3 = smov 28   ;;  %v110_v9 = vld [vmem:[%s207_s0 + $0x6] sm:$0x1]   ;;  %v111_v10 = vld [vmem:[%s207_s0 + $0x5] sm:$0x1]   ;;  %s140_s8 = smov 24  }
   0x6   :  { %s141_s9 = smov 20   ;;  %v112_v11 = vld [vmem:[%s207_s0 + $0x4] sm:$0x1]   ;;  %s142_s12 = smov 16   ;;  %v113_v12 = vld [vmem:[%s207_s0 + $0x3] sm:$0x1]  }
   0x7   :  { %v114_v13 = vld [vmem:[%s207_s0 + $0x2] sm:$0x1]   ;;  %s143_s17 = smov 12   ;;  %s144_s18 = smov 8   ;;  %v115_v14 = vld [vmem:[%s207_s0 + $0x1] sm:$0x1]  }
   0x8   :  { %s145_s21 = smov 4   ;;  %v2_v15 = vld [vmem:[%s207_s0] sm:$0x1]   ;;  %vm27_vm4 = vcmask 425344   ;;  %vm33_vm5 = vcmask 392544   ;;  %vm39_vm6 = vcmask 359744  }
   0x9   :  { %4 = vst.msk [vmem:[#allocation0] sm:$0x1] %vm3_vm0, %v2_v15   ;;  %vm45_vm7 = vcmask 326944   ;;  %vm51_vm8 = vcmask 294144   ;;  %vm57_vm9 = vcmask 261344   ;;  %vm63_vm10 = vcmask 228544  }
   0xa   :  { %13 = vrot.lane.b32.xlu0 %v102_v3, %s134_s19  ;;  %25 = vrot.lane.b32.xlu1 %v104_v4, %s135_s20  ;;  %vm69_vm11 = vcmask 195744   ;;  %vm75_vm12 = vcmask 162944   ;;  %vm81_vm13 = vcmask 130144   ;;  %vm87_vm14 = vcmask 97344  }
   0xb   :  { %37 = vrot.lane.b32.xlu2 %v106_v5, %s136_s23  ;;  %vm93_vm15 = vcmask 64544  }
  0x12   :  { %43 = vrot.lane.b32.xlu0 %v107_v6, %s137_s28  ;;  %49 = vrot.lane.b32.xlu1 %v108_v7, %s138_s29 }
  0x13   :  { %55 = vrot.lane.b32.xlu2 %v109_v8, %s139_s3 }
  0x1a   :  { %61 = vrot.lane.b32.xlu0 %v110_v9, %s140_s8  ;;  %67 = vrot.lane.b32.xlu1 %v111_v10, %s141_s9 }
  0x1b   :  { %73 = vrot.lane.b32.xlu2 %v112_v11, %s142_s12 }
  0x22   :  { %79 = vrot.lane.b32.xlu0 %v113_v12, %s143_s17  ;;  %85 = vrot.lane.b32.xlu1 %v114_v13, %s144_s18 }
  0x23   :  { %91 = vrot.lane.b32.xlu2 %v115_v14, %s145_s21 }
  0x5d   :  { %v32_v16 = vpop.permute.xlu2 %31  }
  0x65   :  { %v38_v17 = vpop.permute.xlu2 %37  }
  0x6d   :  { %v56_v18 = vpop.permute.xlu2 %55  }
  0x74   :  { %v8_v19 = vpop.permute.xlu0 %7   ;;  %v20_v20 = vpop.permute.xlu1 %19  }
  0x75   :  { %10 = vst.msk [vmem:[#allocation0] sm:$0x1] %vm9_vm1, %v8_v19   ;;  %v74_v21 = vpop.permute.xlu2 %73  }
  0x7c   :  { %v14_v22 = vpop.permute.xlu0 %13   ;;  %v26_v23 = vpop.permute.xlu1 %25  }
  0x7d   :  { %16 = vst.msk [vmem:[#allocation0] sm:$0x1] %vm15_vm2, %v14_v22   ;;  %v92_v24 = vpop.permute.xlu2 %91  }
  0x7e   :  { %22 = vst.msk [vmem:[#allocation0] sm:$0x1] %vm21_vm3, %v20_v20  }
  0x7f   :  { %28 = vst.msk [vmem:[#allocation0] sm:$0x1] %vm27_vm4, %v26_v23  }
  0x80   :  { %34 = vst.msk [vmem:[#allocation0] sm:$0x1] %vm33_vm5, %v32_v16  }
  0x81   :  { %40 = vst.msk [vmem:[#allocation0] sm:$0x1] %vm39_vm6, %v38_v17  }
  0x84   :  { %v44_v25 = vpop.permute.xlu0 %43   ;;  %v50_v26 = vpop.permute.xlu1 %49  }
  0x85   :  { %46 = vst.msk [vmem:[#allocation0] sm:$0x1] %vm45_vm7, %v44_v25  }
  0x86   :  { %52 = vst.msk [vmem:[#allocation0] sm:$0x1] %vm51_vm8, %v50_v26  }
  0x87   :  { %58 = vst.msk [vmem:[#allocation0] sm:$0x1] %vm57_vm9, %v56_v18  }
  0x8c   :  { %v62_v27 = vpop.permute.xlu0 %61   ;;  %v68_v28 = vpop.permute.xlu1 %67  }
  0x8d   :  { %64 = vst.msk [vmem:[#allocation0] sm:$0x1] %vm63_vm10, %v62_v27  }
  0x8e   :  { %70 = vst.msk [vmem:[#allocation0] sm:$0x1] %vm69_vm11, %v68_v28  }
  0x8f   :  { %76 = vst.msk [vmem:[#allocation0] sm:$0x1] %vm75_vm12, %v74_v21  }
  0x94   :  { %v80_v29 = vpop.permute.xlu0 %79   ;;  %v86_v30 = vpop.permute.xlu1 %85  }
  0x95   :  { %82 = vst.msk [vmem:[#allocation0] sm:$0x1] %vm81_vm13, %v80_v29  }
  0x96   :  { %88 = vst.msk [vmem:[#allocation0] sm:$0x1] %vm87_vm14, %v86_v30  }
  0x97   :  { %94 = vst.msk [vmem:[#allocation0] sm:$0x1] %vm93_vm15, %v92_v24  }
  0x9e   :  { %v97_v31 = vld [vmem:[#allocation0] sm:$0x1] }
  0x9f   :  { %100 = vst [vmem:[%s208_s1] sm:$0x1] %v97_v31 }

// kernel: tile.28
= control target key start
LH: loop header
LB: loop body
LE: loop exit
PB: predicated region body
PF: predicated region fallthrough
CT: control target
= control target key end

     0   :  { %s28_s0 = inlined_call_operand.vmem [shape: f32[16], index: 0, kind: input, shape index: {}]   ;;  %s29_s1 = inlined_call_operand.vmem [shape: f32[16,16], index: 1, kind: output, shape index: {}]  }
   0x1   :  { %v4_v0 = vld [vmem:[%s28_s0] ss:$0 sm:$0xff] }
   0x2   :  { %5 = vst [vmem:[%s29_s1] sm:$0xff] %v4_v0 }
   0x3   :  { %8 = vst [vmem:[%s29_s1 + $0x8] sm:$0xff] %v4_v0 }

// kernel: tile.29
= control target key start
LH: loop header
LB: loop body
LE: loop exit
PB: predicated region body
PF: predicated region fallthrough
CT: control target
= control target key end

     0   :  { %s7_s6 = smov 3  ;;  %s21_s9 = smov 3  ;;  %vm4_vm0 = vcmask 130048   ;;  %vm11_vm1 = vcmask 1048448   ;;  %vm18_vm2 = vcmask 917248   ;;  %vm25_vm3 = vcmask 786048   ;;  %s129_s0 = inlined_call_operand.vmem [shape: f32[16,16], index: 0, kind: input, shape index: {}]   ;;  %s130_s1 = inlined_call_operand.vmem [shape: f32[1,256], index: 1, kind: output, shape index: {}]  }
   0x1   :  { %v67_v0 = vld [vmem:[%s129_s0 + $0x7] ss:$8 sm:%s7_s6]   ;;  %s82_s10 = smov 112   ;;  %v69_v1 = vld [vmem:[%s129_s0 + $0x5] ss:$8 sm:%s21_s9]   ;;  %s83_s13 = smov 80  }
   0x2   :  { %9 = vrot.lane.b32.xlu0 %v67_v0, %s82_s10  ;;  %23 = vrot.lane.b32.xlu1 %v69_v1, %s83_s13  ;;  %s14_s14 = smov 3  ;;  %s28_s15 = smov 3  ;;  %vm32_vm4 = vcmask 654848   ;;  %vm39_vm5 = vcmask 523648   ;;  %vm46_vm6 = vcmask 392448   ;;  %vm53_vm7 = vcmask 261248  }
   0x3   :  { %s35_s16 = smov 3  ;;  %v68_v3 = vld [vmem:[%s129_s0 + $0x6] ss:$8 sm:%s14_s14]   ;;  %s84_s21 = smov 48   ;;  %v70_v4 = vld [vmem:[%s129_s0 + $0x4] ss:$8 sm:%s28_s15]  }
   0x4   :  { %v71_v2 = vld [vmem:[%s129_s0 + $0x3] ss:$8 sm:%s35_s16]   ;;  %s42_s24 = smov 3  ;;  %s85_s25 = smov 96  }
   0x5   :  { %37 = vrot.lane.b32.xlu2 %v71_v2, %s84_s21  ;;  %s86_s26 = smov 64   ;;  %s49_s27 = smov 3  ;;  %v72_v5 = vld [vmem:[%s129_s0 + $0x2] ss:$8 sm:%s42_s24]  }
   0x6   :  { %v73_v6 = vld [vmem:[%s129_s0 + $0x1] ss:$8 sm:%s49_s27]   ;;  %s87_s3 = smov 32   ;;  %s88_s4 = smov 16  }
   0x7   :  { %s2_s5 = smov 3 }
   0x8   :  { %v3_v7 = vld [vmem:[%s129_s0] ss:$8 sm:%s2_s5]  }
   0x9   :  { %5 = vst.msk [vmem:[#allocation0] ss:$8 sm:$0x3] %vm4_vm0, %v3_v7  }
   0xa   :  { %16 = vrot.lane.b32.xlu0 %v68_v3, %s85_s25  ;;  %30 = vrot.lane.b32.xlu1 %v70_v4, %s86_s26 }
   0xd   :  { %44 = vrot.lane.b32.xlu2 %v72_v5, %s87_s3 }
  0x12   :  { %51 = vrot.lane.b32.xlu0 %v73_v6, %s88_s4 }
  0x5f   :  { %v38_v8 = vpop.permute.xlu2 %37  }
  0x67   :  { %v45_v9 = vpop.permute.xlu2 %44  }
  0x74   :  { %v10_v10 = vpop.permute.xlu0 %9   ;;  %v24_v11 = vpop.permute.xlu1 %23  }
  0x75   :  { %12 = vst.msk [vmem:[#allocation0] ss:$8 sm:$0x3] %vm11_vm1, %v10_v10  }
  0x7c   :  { %v17_v12 = vpop.permute.xlu0 %16   ;;  %v31_v13 = vpop.permute.xlu1 %30  }
  0x7d   :  { %19 = vst.msk [vmem:[#allocation0] ss:$8 sm:$0x3] %vm18_vm2, %v17_v12  }
  0x7e   :  { %26 = vst.msk [vmem:[#allocation0] ss:$8 sm:$0x3] %vm25_vm3, %v24_v11  }
  0x7f   :  { %33 = vst.msk [vmem:[#allocation0] ss:$8 sm:$0x3] %vm32_vm4, %v31_v13  }
  0x80   :  { %40 = vst.msk [vmem:[#allocation0] ss:$8 sm:$0x3] %vm39_vm5, %v38_v8  }
  0x81   :  { %47 = vst.msk [vmem:[#allocation0] ss:$8 sm:$0x3] %vm46_vm6, %v45_v9  }
  0x84   :  { %v52_v14 = vpop.permute.xlu0 %51  }
  0x85   :  { %54 = vst.msk [vmem:[#allocation0] ss:$8 sm:$0x3] %vm53_vm7, %v52_v14  }
  0x8c   :  { %v57_v15 = vld [vmem:[#allocation0] sm:$0x1]  ;;  %v62_v16 = vld [vmem:[#allocation0 + $0x8] sm:$0x1] }
  0x8d   :  { %60 = vst [vmem:[%s130_s1] sm:$0x1] %v57_v15 }
  0x8e   :  { %74 = vst [vmem:[%s130_s1 + $0x1] sm:$0x1] %v62_v16 }

// kernel: bottleneck_forward.1
= control target key start
LH: loop header
LB: loop body
LE: loop exit
PB: predicated region body
PF: predicated region fallthrough
CT: control target
= control target key end

     0   :  { %s847_s24 = smov 0   ;;  %s1136_s0 = inlined_call_operand.vmem [shape: f32[32,256], index: 0, kind: input, shape index: {}]   ;;  %s1137_s1 = inlined_call_operand.vmem [shape: f32[256,64], index: 1, kind: input, shape index: {}]   ;;  %s1138_s2 = inlined_call_operand.vmem [shape: f32[3,64,64], index: 2, kind: input, shape index: {}]   ;;  %s1139_s3 = inlined_call_operand.vmem [shape: f32[64,256], index: 3, kind: input, shape index: {}]   ;;  %s1140_s4 = inlined_call_operand.vmem [shape: f32[1,64], index: 4, kind: input, shape index: {}]   ;;  %s1141_s5 = inlined_call_operand.vmem [shape: f32[1,64], index: 5, kind: input, shape index: {}]   ;;  %s1142_s6 = inlined_call_operand.vmem [shape: f32[1,256], index: 6, kind: input, shape index: {}]   ;;  %s1143_s7 = inlined_call_operand.vmem [shape: f32[32,256], index: 7, kind: output, shape index: {}]  }
   0x1 LB: > { %s740_s25 = sadd.s32 4294967295, %s804_s24   ;;  %p744_p0 = scmp.ge.s32.totalorder %s804_s24, 1  ;;  %s804_s24 = sphi %s847_s24, %s17_s24  }
   0x2   : > { %p239_p1 = scmp.lt.s32.totalorder %s804_s24, 3 }
   0x4   : > { %p240_p2 = pnand %p744_p0, %p239_p1 }
   0x5   : > { %s905_s14 = sshll.u32 (!%p240_p2), %s740_s25, 1 }
   0x6   : > { %243 = sbr.rel (%p240_p2) target bundleno = 606 (0x25e), region = 48  ;;  %p274_p3 = scmp.lt.s32.totalorder (!%p240_p2), %s905_s14, 3 }
   0xb   : > { %v306_v0 = vld [vmem:[%s1137_s1 + $0x78] sm:$0xff]  ;;  %v305_v1 = vld [vmem:[%s1137_s1 + $0x70] sm:$0xff]  ;;  %v304_v4 = vld [vmem:[%s1137_s1 + $0x68] sm:$0xff]  ;;  %s1145_s14 = smov (!%p274_p3, %s905_s14), 3  ;;  %vm394_vm0 = vcmask 523264   ;;  %vm460_vm3 = vcmask 130048  }
   0xc   : > { %v322_v2 = vld [vmem:[%s1137_s1 + $0xf8] sm:$0xff]  ;;  %327 = vmatpush.msra.mxu0 %v306_v0  ;;  %v321_v3 = vld [vmem:[%s1137_s1 + $0xf0] sm:$0xff]  ;;  %v320_v5 = vld [vmem:[%s1137_s1 + $0xe8] sm:$0xff]  ;;  %s785_s8 = sshll.u32 %s1145_s14, 4 }
   0xd   : > { %350 = vmatpush.msra.mxu1 %v322_v2  ;;  %v303_v6 = vld [vmem:[%s1137_s1 + $0x60] sm:$0xff]  ;;  %v302_v8 = vld [vmem:[%s1137_s1 + $0x58] sm:$0xff]  ;;  %v301_v10 = vld [vmem:[%s1137_s1 + $0x50] sm:$0xff]  ;;  %s278_s20 = scalar_lea.vmem %s1136_s0, %s785_s8  ;;  %s285_s17 = scalar_lea.vmem %s1143_s7, %s785_s8 }
   0xe   : > { %328 = vmatpush.msra.mxu0 %v305_v1  ;;  %v319_v7 = vld [vmem:[%s1137_s1 + $0xe0] sm:$0xff]  ;;  %v318_v9 = vld [vmem:[%s1137_s1 + $0xd8] sm:$0xff]  ;;  %v317_v11 = vld [vmem:[%s1137_s1 + $0xd0] sm:$0xff] }
   0xf   : > { %351 = vmatpush.msra.mxu1 %v321_v3  ;;  %v300_v12 = vld [vmem:[%s1137_s1 + $0x48] sm:$0xff]  ;;  %v299_v14 = vld [vmem:[%s1137_s1 + $0x40] sm:$0xff]  ;;  %v393_v16 = vld [vmem:[%s1138_s2 + $0x38] sm:$0xff] }
  0x10   : > { %329 = vmatpush.msra.mxu0 %v304_v4  ;;  %v316_v13 = vld [vmem:[%s1137_s1 + $0xc8] sm:$0xff]  ;;  %v315_v15 = vld [vmem:[%s1137_s1 + $0xc0] sm:$0xff]  ;;  %v760_v17 = vld [vmem:[%s1138_s2 + $0x78] sm:$0xff]  ;;  %409 = vmatpush.msra.mxu2 %v393_v16 }
  0x11   : > { %352 = vmatpush.msra.mxu1 %v320_v5  ;;  %v392_v18 = vld [vmem:[%s1138_s2 + $0x30] sm:$0xff]  ;;  %v298_v20 = vld [vmem:[%s1137_s1 + $0x38] sm:$0xff]  ;;  %445 = vmatpush.msra.mxu3 %v760_v17  ;;  %v391_v23 = vld [vmem:[%s1138_s2 + $0x28] sm:$0xff]  ;;  %v806_v17 = vmov 0.0  }
  0x12   : > { %330 = vmatpush.msra.mxu0 %v303_v6  ;;  %v759_v19 = vld [vmem:[%s1138_s2 + $0x70] sm:$0xff]  ;;  %v314_v21 = vld [vmem:[%s1137_s1 + $0xb8] sm:$0xff]  ;;  %v758_v24 = vld [vmem:[%s1138_s2 + $0x68] sm:$0xff]  ;;  %410 = vmatpush.msra.mxu2 %v392_v18 }
  0x13   : > { %353 = vmatpush.msra.mxu1 %v319_v7  ;;  %v297_v22 = vld [vmem:[%s1137_s1 + $0x30] sm:$0xff]  ;;  %446 = vmatpush.msra.mxu3 %v759_v19  ;;  %v390_v26 = vld [vmem:[%s1138_s2 + $0x20] sm:$0xff]  ;;  %v296_v28 = vld [vmem:[%s1137_s1 + $0x28] sm:$0xff]  ;;  %v375_v7 = vlaneseq }
  0x14   : > { %331 = vmatpush.msra.mxu0 %v302_v8  ;;  %v313_v25 = vld [vmem:[%s1137_s1 + $0xb0] sm:$0xff]  ;;  %v757_v27 = vld [vmem:[%s1138_s2 + $0x60] sm:$0xff]  ;;  %v312_v29 = vld [vmem:[%s1137_s1 + $0xa8] sm:$0xff]  ;;  %411 = vmatpush.msra.mxu2 %v391_v23 }
  0x15   : > { %354 = vmatpush.msra.mxu1 %v318_v9  ;;  %447 = vmatpush.msra.mxu3 %v758_v24  ;;  %v295_v30 = vld [vmem:[%s1137_s1 + $0x20] sm:$0xff]  ;;  %v294_v32 = vld [vmem:[%s1137_s1 + $0x18] sm:$0xff]  ;;  %v293_v34 = vld [vmem:[%s1137_s1 + $0x10] sm:$0xff]  ;;  %v376_v9 = vshrl.u32 %v375_v7, 7 }
  0x16   : > { %332 = vmatpush.msra.mxu0 %v301_v10  ;;  %v311_v31 = vld [vmem:[%s1137_s1 + $0xa0] sm:$0xff]  ;;  %412 = vmatpush.msra.mxu2 %v390_v26  ;;  %v310_v33 = vld [vmem:[%s1137_s1 + $0x98] sm:$0xff]  ;;  %v309_v35 = vld [vmem:[%s1137_s1 + $0x90] sm:$0xff] }
  0x17   : > { %355 = vmatpush.msra.mxu1 %v317_v11  ;;  %448 = vmatpush.msra.mxu3 %v757_v27  ;;  %v292_v36 = vld [vmem:[%s1137_s1 + $0x8] sm:$0xff]  ;;  %v291_v38 = vld [vmem:[%s1137_s1] sm:$0xff]  ;;  %v774_v42 = vld [vmem:[%s1138_s2 + $0xb8] sm:$0xff]  ;;  %v519_v10 = vadd.s32 1, %v376_v9  ;;  %v379_v11 = vand.u32 127, %v375_v7  ;;  %v377_v16 = vadd.s32 8, %v376_v9 }
  0x18   : > { %333 = vmatpush.msra.mxu0 %v300_v12  ;;  %v308_v37 = vld [vmem:[%s1137_s1 + $0x88] sm:$0xff]  ;;  %v307_v39 = vld [vmem:[%s1137_s1 + $0x80] sm:$0xff]  ;;  %v773_v43 = vld [vmem:[%s1138_s2 + $0xb0] sm:$0xff] }
  0x19   : > { %356 = vmatpush.msra.mxu1 %v316_v13  ;;  %v991_v40 = vld [vmem:[%s278_s20] sm:$0xff]  ;;  %v993_v41 = vld [vmem:[%s278_s20 + $0x8] sm:$0xff]  ;;  %v1009_v46 = vld [vmem:[%s278_s20 + $0x10] sm:$0xff]  ;;  %vm521_vm1 = vcmp.eq.s32.totalorder %v379_v11, %v519_v10  ;;  %v520_v19 = vadd.s32 1, %v377_v16  ;;  %vm424_vm2 = vcmp.eq.s32.totalorder %v379_v11, %v376_v9  ;;  %v381_v24 = vadd.s32 4294967295, %v377_v16 }
  0x1a   : > { %334 = vmatpush.msra.mxu0 %v299_v14  ;;  %v772_v44 = vld [vmem:[%s1138_s2 + $0xa8] sm:$0xff]  ;;  %v771_v45 = vld [vmem:[%s1138_s2 + $0xa0] sm:$0xff]  ;;  %v1011_v47 = vld [vmem:[%s278_s20 + $0x18] sm:$0xff]  ;;  %v380_v14 = vadd.s32 4294967295, %v376_v9  ;;  %v523_v18 = vsel %vm521_vm1, 1.0, %v806_v17  ;;  %vm425_vm6 = vcmp.eq.s32.totalorder %v379_v11, %v377_v16 }
  0x1b   : > { %357 = vmatpush.msra.mxu1 %v315_v15  ;;  %v389_v48 = vld [vmem:[%s1138_s2 + $0x18] sm:$0xff]  ;;  %v388_v51 = vld [vmem:[%s1138_s2 + $0x10] sm:$0xff]  ;;  %v387_v54 = vld [vmem:[%s1138_s2 + $0x8] sm:$0xff]  ;;  %vm522_vm5 = vcmp.eq.s32.totalorder %v379_v11, %v520_v19  ;;  %vm383_vm7 = vcmp.eq.s32.totalorder %v379_v11, %v381_v24 }
  0x1c   : > { %335 = vmatpush.msra.mxu0 %v298_v20  ;;  %v756_v49 = vld [vmem:[%s1138_s2 + $0x58] sm:$0xff]  ;;  %413 = vmatpush.msra.mxu2 %v389_v48  ;;  %v755_v52 = vld [vmem:[%s1138_s2 + $0x50] sm:$0xff]  ;;  %v754_v55 = vld [vmem:[%s1138_s2 + $0x48] sm:$0xff]  ;;  %vm382_vm4 = vcmp.eq.s32.totalorder %v379_v11, %v380_v14  ;;  %v524_v27 = vsel %vm522_vm5, 1.0, %v806_v17 }
  0x1d   : > { %358 = vmatpush.msra.mxu1 %v314_v21  ;;  %v770_v50 = vld [vmem:[%s1138_s2 + $0x98] sm:$0xff]  ;;  %449 = vmatpush.msra.mxu3 %v756_v49  ;;  %v769_v53 = vld [vmem:[%s1138_s2 + $0x90] sm:$0xff]  ;;  %v768_v56 = vld [vmem:[%s1138_s2 + $0x88] sm:$0xff]  ;;  %v384_v23 = vsel %vm382_vm4, 1.0, %v806_v17 }
  0x1e   : > { %336 = vmatpush.msra.mxu0 %v297_v22  ;;  %414 = vmatpush.msra.mxu2 %v388_v51  ;;  %v386_v57 = vld [vmem:[%s1138_s2] sm:$0xff]  ;;  %v426_v22 = vsel %vm424_vm2, 1.0, %v806_v17  ;;  %v611_v26 = vld [vmem:[%s1139_s3 + $0x78] sm:$0xff] }
  0x1f   : > { %359 = vmatpush.msra.mxu1 %v313_v25  ;;  %450 = vmatpush.msra.mxu3 %v755_v52  ;;  %v753_v58 = vld [vmem:[%s1138_s2 + $0x40] sm:$0xff]  ;;  %v610_v25 = vld [vmem:[%s1139_s3 + $0x70] sm:$0xff] }
  0x20   : > { %337 = vmatpush.msra.mxu0 %v296_v28  ;;  %415 = vmatpush.msra.mxu2 %v387_v54  ;;  %v767_v59 = vld [vmem:[%s1138_s2 + $0x80] sm:$0xff] }
  0x21   : > { %360 = vmatpush.msra.mxu1 %v312_v29  ;;  %451 = vmatpush.msra.mxu3 %v754_v55  ;;  %v796_v60 = vld [vmem:[%s1140_s4] ss:$0 sm:$0xff]  ;;  %v609_v29 = vld [vmem:[%s1139_s3 + $0x68] sm:$0xff] }
  0x22   : > { %338 = vmatpush.msra.mxu0 %v295_v30  ;;  %416 = vmatpush.msra.mxu2 %v386_v57  ;;  %v608_v28 = vld [vmem:[%s1139_s3 + $0x60] sm:$0xff]  ;;  %v606_v30 = vld [vmem:[%s1139_s3 + $0x50] sm:$0xff] }
  0x23   : > { %361 = vmatpush.msra.mxu1 %v311_v31  ;;  %452 = vmatpush.msra.mxu3 %v753_v58  ;;  %v607_v31 = vld [vmem:[%s1139_s3 + $0x58] sm:$0xff]  ;;  %v797_v52 = vld [vmem:[%s1141_s5] ss:$0 sm:$0xff] }
  0x24   : > { %339 = vmatpush.msra.mxu0 %v294_v32  ;;  %v604_v32 = vld [vmem:[%s1139_s3 + $0x40] sm:$0xff] }
  0x25   : > { %362 = vmatpush.msra.mxu1 %v310_v33  ;;  %v427_v33 = vsel %vm425_vm6, 1.0, %v806_v17 }
  0x26   : > { %340 = vmatpush.msra.mxu0 %v293_v34  ;;  %v385_v34 = vsel %vm383_vm7, 1.0, %v806_v17 }
  0x27   : > { %363 = vmatpush.msra.mxu1 %v309_v35  ;;  %v605_v35 = vld [vmem:[%s1139_s3 + $0x48] sm:$0xff] }
  0x28   : > { %341 = vmatpush.msra.mxu0 %v292_v36  ;;  %v602_v36 = vld [vmem:[%s1139_s3 + $0x30] sm:$0xff] }
  0x29   : > { %364 = vmatpush.msra.mxu1 %v308_v37  ;;  %v603_v37 = vld [vmem:[%s1139_s3 + $0x38] sm:$0xff] }
  0x2a   : > { %342 = vmatpush.msra.mxu0 %v291_v38  ;;  %v600_v38 = vld [vmem:[%s1139_s3 + $0x20] sm:$0xff] }
  0x2b   : > { %365 = vmatpush.msra.mxu1 %v307_v39  ;;  %343 = vmatmul.f32.vlgmr.msra.gmra.mxu0 %v991_v40  ;;  %v601_v39 = vld [vmem:[%s1139_s3 + $0x28] sm:$0xff] }
  0x2c   : > { %366 = vmatmul.f32.vlgmr.msra.gmra.mxu1 %v993_v41  ;;  %542 = vmatpush.msrb.mxu0 %v774_v42  ;;  %v598_v42 = vld [vmem:[%s1139_s3 + $0x10] sm:$0xff] }
  0x2e   : > { %543 = vmatpush.msrb.mxu0 %v773_v43  ;;  %v599_v43 = vld [vmem:[%s1139_s3 + $0x18] sm:$0xff] }
  0x30   : > { %544 = vmatpush.msrb.mxu0 %v772_v44  ;;  %v596_v44 = vld [vmem:[%s1139_s3] sm:$0xff] }
  0x32   : > { %545 = vmatpush.msrb.mxu0 %v771_v45  ;;  %v597_v45 = vld [vmem:[%s1139_s3 + $0x8] sm:$0xff] }
  0x33   : > { %346 = vmatmul.f32.gmra.mxu0 %v1009_v46 }
  0x34   : > { %369 = vmatmul.f32.gmra.mxu1 %v1011_v47  ;;  %546 = vmatpush.msrb.mxu0 %v770_v50 }
  0x36   : > { %547 = vmatpush.msrb.mxu0 %v769_v53 }
  0x38   : > { %548 = vmatpush.msrb.mxu0 %v768_v56 }
  0x3a   : > { %549 = vmatpush.msrb.mxu0 %v767_v59 }
  0xa8   : > { %v344_v61 = vpop.f32.mrf.mxu0 }
  0xa9   : > { %v367_v62 = vpop.f32.mrf.mxu1  ;;  %v345_v63 = vadd.f32 %v796_v60, %v344_v61 }
  0xab   : > { %v368_v0 = vadd.f32 %v367_v62, %v345_v63  ;;  %v612_v63 = vld [vmem:[%s1142_s6] sm:$0x3] }
  0xad   : > { %v373_v1 = vmax.f32 %v368_v0, 0.0  ;;  %v614_v0 = vperm.slane %v612_v63, 0 }
  0xaf   : > { %751 = vmatmul.msk.f32.vlgmr.msra.gmra.mxu2 %vm394_vm0, %v373_v1  ;;  %761 = vmatmul.msk.f32.vlgmr.msra.gmra.mxu3 %vm394_vm0, %v373_v1 }
  0xb0   : > { %775 = vmatmul.msk.f32.vlgmr.msrb.gmra.mxu0 %vm394_vm0, %v373_v1  ;;  %v347_v2 = vpop.f32.mrf.mxu0  ;;  %v615_v1 = vperm.slane %v612_v63, 1 }
  0xb1   : > { %v370_v3 = vpop.f32.mrf.mxu1  ;;  %v348_v4 = vadd.f32 %v796_v60, %v347_v2 }
  0xb3   : > { %v371_v5 = vadd.f32 %v370_v3, %v348_v4 }
  0xb5   : > { %v374_v6 = vmax.f32 %v371_v5, 0.0 }
  0xb7   : > { %752 = vmatmul.msk.f32.gmra.mxu2 %vm394_vm0, %v374_v6  ;;  %762 = vmatmul.msk.f32.gmra.mxu3 %vm394_vm0, %v374_v6 }
  0xb8   : > { %776 = vmatmul.msk.f32.gmra.mxu0 %vm394_vm0, %v374_v6 }
 0x12d   : > { %v551_v8 = vpop.f32.mrf.mxu0 }
 0x132   : > { %v418_v12 = vpop.f32.mrf.mxu2  ;;  %v454_v13 = vpop.f32.mrf.mxu3 }
 0x135   : > { %v554_v15 = vpop.f32.mrf.mxu0 }
 0x136   : > { %577 = vmatpush.msrb.mxu1 %v554_v15 }
 0x138   : > { %578 = vmatpush.msrb.mxu1 %v551_v8 }
 0x139   : > { %777 = vmatmul.msk.f32.vlgmr.msrb.gmra.mxu1 %vm460_vm3, %v523_v18 }
 0x13a   : > { %v421_v20 = vpop.f32.mrf.mxu2  ;;  %v457_v21 = vpop.f32.mrf.mxu3 }
 0x13b   : > { %481 = vmatpush.msrb.mxu2 %v457_v21  ;;  %510 = vmatpush.msrb.mxu3 %v421_v20 }
 0x13d   : > { %482 = vmatpush.msrb.mxu2 %v454_v13  ;;  %511 = vmatpush.msrb.mxu3 %v418_v12 }
 0x13e   : > { %763 = vmatmul.msk.f32.vlgmr.msrb.gmra.mxu2 %vm460_vm3, %v426_v22  ;;  %765 = vmatmul.msk.f32.vlgmr.msrb.gmra.mxu3 %vm460_vm3, %v384_v23 }
 0x13f   : > { %632 = vmatpush.msra.mxu2 %v610_v25  ;;  %655 = vmatpush.msra.mxu3 %v611_v26 }
 0x141   : > { %778 = vmatmul.msk.f32.gmra.mxu1 %vm460_vm3, %v524_v27  ;;  %633 = vmatpush.msra.mxu2 %v608_v28 }
 0x142   : > { %656 = vmatpush.msra.mxu3 %v609_v29 }
 0x143   : > { %634 = vmatpush.msra.mxu2 %v606_v30 }
 0x144   : > { %657 = vmatpush.msra.mxu3 %v607_v31 }
 0x145   : > { %635 = vmatpush.msra.mxu2 %v604_v32 }
 0x146   : > { %764 = vmatmul.msk.f32.gmra.mxu2 %vm460_vm3, %v427_v33  ;;  %766 = vmatmul.msk.f32.gmra.mxu3 %vm460_vm3, %v385_v34 }
 0x147   : > { %658 = vmatpush.msra.mxu3 %v605_v35  ;;  %636 = vmatpush.msra.mxu2 %v602_v36 }
 0x149   : > { %659 = vmatpush.msra.mxu3 %v603_v37  ;;  %637 = vmatpush.msra.mxu2 %v600_v38 }
 0x14b   : > { %660 = vmatpush.msra.mxu3 %v601_v39  ;;  %638 = vmatpush.msra.mxu2 %v598_v42 }
 0x14d   : > { %661 = vmatpush.msra.mxu3 %v599_v43  ;;  %639 = vmatpush.msra.mxu2 %v596_v44 }
 0x14f   : > { %662 = vmatpush.msra.mxu3 %v597_v45 }
 0x1b6   : > { %v580_v48 = vpop.f32.mrf.mxu1 }
 0x1be   : > { %v583_v56 = vpop.f32.mrf.mxu1 }
 0x1c1   : > { %v484_v49 = vpop.f32.mrf.mxu2  ;;  %v513_v50 = vpop.f32.mrf.mxu3 }
 0x1c2   : > { %v514_v51 = vadd.f32 %v513_v50, %v484_v49 }
 0x1c4   : > { %v586_v53 = vadd.f32 %v580_v48, %v514_v51 }
 0x1c6   : > { %v592_v54 = vadd.f32 %v797_v52, %v586_v53 }
 0x1c8   : > { %v594_v55 = vmax.f32 %v592_v54, 0.0 }
 0x1c9   : > { %v487_v57 = vpop.f32.mrf.mxu2  ;;  %v516_v58 = vpop.f32.mrf.mxu3 }
 0x1ca   : > { %v517_v59 = vadd.f32 %v516_v58, %v487_v57  ;;  %779 = vmatmul.msk.f32.vlgmr.msra.gmra.mxu2 %vm394_vm0, %v594_v55  ;;  %781 = vmatmul.msk.f32.vlgmr.msra.gmra.mxu3 %vm394_vm0, %v594_v55 }
 0x1cc   : > { %v587_v60 = vadd.f32 %v583_v56, %v517_v59 }
 0x1ce   : > { %v593_v61 = vadd.f32 %v797_v52, %v587_v60 }
 0x1d0   : > { %v595_v62 = vmax.f32 %v593_v61, 0.0 }
 0x1d2   : > { %780 = vmatmul.msk.f32.gmra.mxu2 %vm394_vm0, %v595_v62  ;;  %782 = vmatmul.msk.f32.gmra.mxu3 %vm394_vm0, %v595_v62 }
 0x24d   : > { %v641_v2 = vpop.f32.mrf.mxu2  ;;  %v664_v3 = vpop.f32.mrf.mxu3 }
 0x24e   : > { %v642_v4 = vadd.f32 %v641_v2, %v614_v0  ;;  %v665_v5 = vadd.f32 %v664_v3, %v615_v1 }
 0x250   : > { %v670_v6 = vadd.f32 %v642_v4, %v991_v40  ;;  %v671_v7 = vadd.f32 %v665_v5, %v993_v41 }
 0x252   : > { %v674_v8 = vmax.f32 %v670_v6, 0.0  ;;  %v675_v9 = vmax.f32 %v671_v7, 0.0 }
 0x254   : > { %678 = vst [vmem:[%s285_s17] sm:$0xff] %v674_v8 }
 0x255   : > { %679 = vst [vmem:[%s285_s17 + $0x8] sm:$0xff] %v675_v9  ;;  %v644_v10 = vpop.f32.mrf.mxu2  ;;  %v667_v11 = vpop.f32.mrf.mxu3 }
 0x256   : > { %v645_v12 = vadd.f32 %v644_v10, %v614_v0  ;;  %v668_v13 = vadd.f32 %v667_v11, %v615_v1 }
 0x258   : > { %v672_v14 = vadd.f32 %v645_v12, %v1009_v46  ;;  %v673_v15 = vadd.f32 %v668_v13, %v1011_v47 }
 0x25a   : > { %v676_v40 = vmax.f32 %v672_v14, 0.0  ;;  %v677_v16 = vmax.f32 %v673_v15, 0.0 }
 0x25c   : > { %680 = vst [vmem:[%s285_s17 + $0x10] sm:$0xff] %v676_v40 }
 0x25d   : > { %681 = vst [vmem:[%s285_s17 + $0x18] sm:$0xff] %v677_v16 }
 0x25e PF: > { %s17_s24 = sadd.s32 1, %s804_s24  }
 0x25f   : > { %p14_p4 = scmp.ge.s32.totalorder %s17_s24, 4  }
 0x261   :  { %16 = sbr.rel (!%p14_p4) target bundleno = 1 (0x1), region = 80 }

</bundles_post_ra>
